<compile_context>
chip_gen: v7x
topology: tpu7x:2x2x1
jax: 0.10.0
libtpu: 0.0.40
codegen_flags: <defaults>
</compile_context>

<pallas_src>
import jax
import jax.numpy as jnp
from jax.experimental import pallas as pl
from jax.experimental.pallas import tpu as pltpu


def _round_up(a: int, m: int) -> int:
    return ((a + m - 1) // m) * m


def adapter_kernel(x_ref, wd_ref, bd_ref, wu_ref, bu_ref, o_ref):
    # x_ref:  (tm, H)  f32 row tile of the input (also the residual)
    # wd_ref: (H, Bn)  bf16 down_proj weight, pre-transposed (in, out)
    # bd_ref: (1, Bn)  f32 down_proj bias
    # wu_ref: (Bn, H)  bf16 up_proj weight, pre-transposed (in, out)
    # bu_ref: (1, H)   f32 up_proj bias
    x = x_ref[...]                                        # f32 residual
    # down projection: bf16 MXU operands, f32 accumulation, f32 bias add
    h = jnp.dot(x.astype(jnp.bfloat16), wd_ref[...],
                preferred_element_type=jnp.float32) + bd_ref[...]
    # ReLU
    h = jnp.maximum(h, 0.0)
    # (dropout == identity in eval mode)
    # up projection: bf16 MXU operands, f32 accumulation, f32 bias add
    y = jnp.dot(h.astype(jnp.bfloat16), wu_ref[...],
                preferred_element_type=jnp.float32) + bu_ref[...]
    # residual add in f32
    o_ref[...] = (x + y).astype(o_ref.dtype)


def adapter_forward(x, w_down, b_down, w_up, b_up, *, tm=256):
    """x: (B, S, H) f32.  w_down: (H, Bn), b_down: (Bn,), w_up: (Bn, H), b_up: (H,)."""
    B, S, H = x.shape
    Bn = w_down.shape[1]
    R = B * S

    # ---- row tiling: large MXU-friendly tile, zero-padded ragged tail ----
    tm_eff = min(tm, _round_up(R, 8))     # shrink for tiny inputs; always 8-aligned
    R_pad = _round_up(R, tm_eff)

    x2d = x.reshape(R, H)
    if R_pad != R:
        x2d = jnp.pad(x2d, ((0, R_pad - R), (0, 0)))

    # bf16 MXU operands (cast once, outside the kernel); biases stay f32.
    wd = w_down.astype(jnp.bfloat16)
    wu = w_up.astype(jnp.bfloat16)
    bd2d = b_down.reshape(1, Bn).astype(jnp.float32)
    bu2d = b_up.reshape(1, H).astype(jnp.float32)

    grid = (R_pad // tm_eff,)

    # VMEM budget: double-buffered x/out row tiles + single-buffered weights.
    tile_bytes = tm_eff * H * 4
    resident_bytes = 2 * H * Bn * 2 + (Bn + H) * 4
    est_vmem = 4 * tile_bytes + resident_bytes
    vmem_limit = int(min(max(32 << 20, 2 * est_vmem), 96 << 20))

    cost = pl.CostEstimate(
        flops=4 * R_pad * H * Bn,                                   # two matmuls
        transcendentals=0,
        bytes_accessed=2 * R_pad * H * 4 + 2 * H * Bn * 2 + (Bn + H) * 4,
    )

    resident = dict(pipeline_mode=pl.Buffered(1))   # constant index_map: 1 buffer

    out2d = pl.pallas_call(
        adapter_kernel,
        out_shape=jax.ShapeDtypeStruct((R_pad, H), x.dtype),
        grid_spec=pltpu.PrefetchScalarGridSpec(
            num_scalar_prefetch=0,
            grid=grid,
            in_specs=[
                pl.BlockSpec((tm_eff, H), lambda i: (i, 0)),           # x (streamed)
                pl.BlockSpec((H, Bn), lambda i: (0, 0), **resident),   # w_down
                pl.BlockSpec((1, Bn), lambda i: (0, 0), **resident),   # b_down
                pl.BlockSpec((Bn, H), lambda i: (0, 0), **resident),   # w_up
                pl.BlockSpec((1, H), lambda i: (0, 0), **resident),    # b_up
            ],
            out_specs=pl.BlockSpec((tm_eff, H), lambda i: (i, 0)),
        ),
        compiler_params=pltpu.CompilerParams(
            dimension_semantics=("parallel",),
            vmem_limit_bytes=vmem_limit,
        ),
        cost_estimate=cost,
    )(x2d, wd, bd2d, wu, bu2d)

    return out2d[:R].reshape(B, S, H)


def adapter_reference(x, w_down, b_down, w_up, b_up):
    """Pure-JAX f32 reference of the PyTorch forward (eval mode)."""
    h = jnp.maximum(x @ w_down + b_down, 0.0)
    return x + (h @ w_up + b_up)


def adapter_reference_mixed(x, w_down, b_down, w_up, b_up):
    """Reference with the same bf16-operand / f32-accumulate matmuls as the kernel."""
    h = jnp.dot(x.astype(jnp.bfloat16), w_down.astype(jnp.bfloat16),
                preferred_element_type=jnp.float32) + b_down
    h = jnp.maximum(h, 0.0)
    y = jnp.dot(h.astype(jnp.bfloat16), w_up.astype(jnp.bfloat16),
                preferred_element_type=jnp.float32) + b_up
    return x + y


if __name__ == "__main__":
    key = jax.random.PRNGKey(0)
    keys = jax.random.split(key, 10)

    def make_case(kx, kwd, kbd, kwu, kbu, *, batch, seq, hidden, bottleneck):
        x = jax.random.normal(kx, (batch, seq, hidden), dtype=jnp.float32)
        # Weights stored pre-transposed (in, out) for row-major MXU matmuls.
        # NOTE: the PyTorch module zero-inits up_proj (identity adapter at init);
        # small random values here so the up-proj path is actually exercised.
        w_down = 0.1 * jax.random.normal(kwd, (hidden, bottleneck), dtype=jnp.float32)
        b_down = 0.1 * jax.random.normal(kbd, (bottleneck,), dtype=jnp.float32)
        w_up = 0.1 * jax.random.normal(kwu, (bottleneck, hidden), dtype=jnp.float32)
        b_up = 0.1 * jax.random.normal(kbu, (hidden,), dtype=jnp.float32)
        return x, w_down, b_down, w_up, b_up

    # Case 1: tiny module-consistent shapes (batch=2, seq=8, hidden=32, bottleneck=64).
    case1 = make_case(*keys[:5], batch=2, seq=8, hidden=32, bottleneck=64)
    # Case 2: lane-dense hidden (multiple of 128) with a ragged row count
    # (R=384, tm=256 -> padded to 512, 2 grid steps) to exercise the padding path.
    case2 = make_case(*keys[5:], batch=4, seq=96, hidden=128, bottleneck=64)

    for x, w_down, b_down, w_up, b_up in (case1, case2):
        out = jax.block_until_ready(adapter_forward(x, w_down, b_down, w_up, b_up))
        assert out.shape == x.shape and out.dtype == x.dtype
        # Tight check vs a reference using the same bf16-operand matmuls ...
        ref_mixed = adapter_reference_mixed(x, w_down, b_down, w_up, b_up)
        assert jnp.allclose(out, ref_mixed, atol=1e-4, rtol=1e-4), "mismatch vs mixed ref"
        # ... and a sanity check vs the exact f32 PyTorch-semantics reference.
        ref_f32 = adapter_reference(x, w_down, b_down, w_up, b_up)
        assert jnp.allclose(out, ref_f32, atol=2e-2, rtol=2e-2), "mismatch vs f32 ref"

    print("KERNEL_OK")
</pallas_src>

<mosaic_0001>
module attributes {stable_mosaic.version = 11 : i64} {
  func.func @adapter_kernel(%arg0: i32, %arg1: memref<16x32xf32, #tpu.memory_space<vmem>>, %arg2: memref<32x64xbf16, #tpu.memory_space<vmem>>, %arg3: memref<1x64xf32, #tpu.memory_space<vmem>>, %arg4: memref<64x32xbf16, #tpu.memory_space<vmem>>, %arg5: memref<1x32xf32, #tpu.memory_space<vmem>>, %arg6: memref<16x32xf32, #tpu.memory_space<vmem>>) attributes {dimension_semantics = [#tpu.dimension_semantics<parallel>], iteration_bounds = array<i64: 1>, scalar_prefetch = 0 : i64, scratch_operands = 0 : i64, tpu.core_type = #tpu.core_type<tc>, window_params = [{transform_indices = @transform_0, window_bounds = array<i64: 16, 32>}, {pipeline_mode = #tpu.pipeline_mode<synchronous>, transform_indices = @transform_1, window_bounds = array<i64: 32, 64>}, {pipeline_mode = #tpu.pipeline_mode<synchronous>, transform_indices = @transform_2, window_bounds = array<i64: 1, 64>}, {pipeline_mode = #tpu.pipeline_mode<synchronous>, transform_indices = @transform_3, window_bounds = array<i64: 64, 32>}, {pipeline_mode = #tpu.pipeline_mode<synchronous>, transform_indices = @transform_4, window_bounds = array<i64: 1, 32>}, {transform_indices = @transform_5, window_bounds = array<i64: 16, 32>}]} {
    %c0 = arith.constant 0 : index
    %c0_0 = arith.constant 0 : index
    %0 = vector.load %arg1[%c0, %c0_0] : memref<16x32xf32, #tpu.memory_space<vmem>>, vector<16x32xf32>
    %1 = arith.truncf %0 : vector<16x32xf32> to vector<16x32xbf16>
    %c0_1 = arith.constant 0 : index
    %c0_2 = arith.constant 0 : index
    %2 = vector.load %arg2[%c0_1, %c0_2] : memref<32x64xbf16, #tpu.memory_space<vmem>>, vector<32x64xbf16>
    %cst = arith.constant dense<0.000000e+00> : vector<16x64xf32>
    %3 = tpu.matmul %1, %2, %cst {dimension_numbers = #tpu.dot_dimension_numbers<[1], [0], [0], [1], [0, 0, 1, 1], [], []>} : vector<16x32xbf16>, vector<32x64xbf16>, vector<16x64xf32> -> vector<16x64xf32>
    %c0_3 = arith.constant 0 : index
    %c0_4 = arith.constant 0 : index
    %4 = vector.load %arg3[%c0_3, %c0_4] : memref<1x64xf32, #tpu.memory_space<vmem>>, vector<1x64xf32>
    %5 = vector.broadcast %4 : vector<1x64xf32> to vector<16x64xf32>
    %6 = arith.addf %3, %5 : vector<16x64xf32>
    %cst_5 = arith.constant 0.000000e+00 : f32
    %7 = vector.broadcast %cst_5 : f32 to vector<16x64xf32>
    %8 = arith.maximumf %6, %7 : vector<16x64xf32>
    %9 = arith.truncf %8 : vector<16x64xf32> to vector<16x64xbf16>
    %c0_6 = arith.constant 0 : index
    %c0_7 = arith.constant 0 : index
    %10 = vector.load %arg4[%c0_6, %c0_7] : memref<64x32xbf16, #tpu.memory_space<vmem>>, vector<64x32xbf16>
    %cst_8 = arith.constant dense<0.000000e+00> : vector<16x32xf32>
    %11 = tpu.matmul %9, %10, %cst_8 {dimension_numbers = #tpu.dot_dimension_numbers<[1], [0], [0], [1], [0, 0, 1, 1], [], []>} : vector<16x64xbf16>, vector<64x32xbf16>, vector<16x32xf32> -> vector<16x32xf32>
    %c0_9 = arith.constant 0 : index
    %c0_10 = arith.constant 0 : index
    %12 = vector.load %arg5[%c0_9, %c0_10] : memref<1x32xf32, #tpu.memory_space<vmem>>, vector<1x32xf32>
    %13 = vector.broadcast %12 : vector<1x32xf32> to vector<16x32xf32>
    %14 = arith.addf %11, %13 : vector<16x32xf32>
    %15 = arith.addf %0, %14 : vector<16x32xf32>
    %c0_11 = arith.constant 0 : index
    %c0_12 = arith.constant 0 : index
    %16 = vector.load %arg6[%c0_11, %c0_12] : memref<16x32xf32, #tpu.memory_space<vmem>>, vector<16x32xf32>
    tpu.vector_store %arg6[%c0_11, %c0_12], %15 {strides = array<i32>} : memref<16x32xf32, #tpu.memory_space<vmem>>, vector<16x32xf32>,
    return
  }
  func.func @transform_0(%arg0: i32) -> (i32, i32) {
    %c0_i32 = arith.constant 0 : i32
    %c0_i32_0 = arith.constant 0 : i32
    return %arg0, %c0_i32 : i32, i32
  }
  func.func @transform_1(%arg0: i32) -> (i32, i32) {
    %c0_i32 = arith.constant 0 : i32
    %c0_i32_0 = arith.constant 0 : i32
    %c0_i32_1 = arith.constant 0 : i32
    return %c0_i32, %c0_i32_0 : i32, i32
  }
  func.func @transform_2(%arg0: i32) -> (i32, i32) {
    %c0_i32 = arith.constant 0 : i32
    %c0_i32_0 = arith.constant 0 : i32
    %c0_i32_1 = arith.constant 0 : i32
    return %c0_i32, %c0_i32_0 : i32, i32
  }
  func.func @transform_3(%arg0: i32) -> (i32, i32) {
    %c0_i32 = arith.constant 0 : i32
    %c0_i32_0 = arith.constant 0 : i32
    %c0_i32_1 = arith.constant 0 : i32
    return %c0_i32, %c0_i32_0 : i32, i32
  }
  func.func @transform_4(%arg0: i32) -> (i32, i32) {
    %c0_i32 = arith.constant 0 : i32
    %c0_i32_0 = arith.constant 0 : i32
    %c0_i32_1 = arith.constant 0 : i32
    return %c0_i32, %c0_i32_0 : i32, i32
  }
  func.func @transform_5(%arg0: i32) -> (i32, i32) {
    %c0_i32 = arith.constant 0 : i32
    %c0_i32_0 = arith.constant 0 : i32
    return %arg0, %c0_i32 : i32, i32
  }
}

</mosaic_0001>

<bundles_post_ra>
// kernel: tpu_custom_call.1
= control target key start
LH: loop header
LB: loop body
LE: loop exit
PB: predicated region body
PF: predicated region fallthrough
CT: control target
= control target key end

     0   :  { %v273_v1 = vmov 0.0   ;;  %vm274_vm0 = vmmov 0   ;;  %vm48_vm1 = vcmask 261120   ;;  %s353_s0 = inlined_call_operand.vmem [shape: f32[16,32], index: 0, kind: input, shape index: {}]   ;;  %s354_s1 = inlined_call_operand.vmem [shape: bf16[32,64], index: 1, kind: input, shape index: {}]   ;;  %s355_s2 = inlined_call_operand.vmem [shape: f32[1,64], index: 2, kind: input, shape index: {}]   ;;  %s356_s3 = inlined_call_operand.vmem [shape: bf16[64,32], index: 3, kind: input, shape index: {}]   ;;  %s357_s4 = inlined_call_operand.vmem [shape: f32[1,32], index: 4, kind: input, shape index: {}]   ;;  %s358_s5 = inlined_call_operand.hbm [shape: f32[16,32], index: 5, kind: output, shape index: {}]  }
   0x1   :  { %v243_v0 = vld [vmem:[%s354_s1] sm:$0xff]   ;;  %218 = vmatprep.subr.bf16.mxu0 %v273_v1  ;;  %v244_v2 = vld [vmem:[%s354_s1 + $0x8] sm:$0xff]   ;;  %226 = vmatprep.subr.bf16.mxu1 %v273_v1 }
   0x2   :  { %219 = vmatpush3.bf16.msra.mxu0 %v243_v0  ;;  %222 = vmatprep.mubr.msk.bf16.mxu0 %vm274_vm0, %v273_v1  ;;  %v22_v3 = vld [vmem:[%s353_s0] sm:$0xff]  ;;  %v23_v4 = vld [vmem:[%s353_s0 + $0x8] sm:$0xff] }
   0x3   :  { %220 = vmatprep.subr.bf16.mxu0 %v273_v1  ;;  %v245_v5 = vld [vmem:[%s356_s3] sm:$0xff]   ;;  %234 = vmatprep.mubr.msk.bf16.mxu1 %vm274_vm0, %v273_v1  ;;  %v246_v6 = vld [vmem:[%s356_s3 + $0x8] sm:$0xff]   ;;  %v24_v7 = vpack.c.bf16 %v23_v4, %v22_v3 }
   0x4   :  { %227 = vmatpush3.bf16.msra.mxu1 %v245_v5 }
   0x5   :  { %228 = vmatprep.subr.bf16.mxu1 %v273_v1 }
   0x6   :  { %221 = vmatpush3.bf16.msra.mxu0 %v244_v2 }
   0x7   :  { %10 = vsyncpa [#allocation3], 0  ;;  %v247_v8 = vld [vmem:[%s356_s3 + $0x10] sm:$0xff]   ;;  %v248_v9 = vld [vmem:[%s356_s3 + $0x18] sm:$0xff]   ;;  %vm135_vm2 = vcmask 523264   ;;  %s275_s3 = smov [#allocation2]  }
   0x8   :  { %229 = vmatpush3.bf16.msra.mxu1 %v246_v6  ;;  %v200_v10 = vld [vmem:[%s355_s2] ss:$0 sm:$0xff]  ;;  %s189_s2 = sshll.u32 %s275_s3, 4  ;;  %s190_s2 = int_to_ptr.vmem [resolvable:$true] %s189_s2 }
   0x9   :  { %223 = vmatmul.mubr.msk.bf16.vlgmr.msra.gmra.mrb[0].mxu0 %vm48_vm1, %v24_v7  ;;  %230 = vmatprep.subr.bf16.mxu1 %v273_v1  ;;  %v204_v20 = vld [vmem:[%s357_s4] ss:$0 sm:$0xff]  ;;  %s249_s11 = scalar_lea.vmem %s190_s2, 256  ;;  %p254_p1 = scmp.lt.s32.totalorder %s190_s2, %s190_s2 }
   0xa   :  { %p250_p0 = scmp.ne.s32.totalorder %s190_s2, %s249_s11  ;;  %p255_p2 = scmp.lt.s32.totalorder %s249_s11, %s249_s11 }
   0xc   :  { %231 = vmatpush3.bf16.msra.mxu1 %v247_v8  ;;  %p256_p3 = por %p255_p2, %p254_p1 }
   0xd   :  { %232 = vmatprep.subr.bf16.mxu1 %v273_v1 }
   0xe   :  { %p257_p4 = pnand %p256_p3, %p250_p0 }
  0x10   :  { %233 = vmatpush3.bf16.msra.mxu1 %v248_v9 }
  0xdc   :  { %v86_v11 = vpop.f32.mrb[0].mxu0 }
  0xdd   :  { %v87_v12 = vadd.f32 %v200_v10, %v86_v11  ;;  %v224_v13 = vpop.f32.mrb[1].mxu0 }
  0xde   :  { %v89_v14 = vpop.f32.mrb[2].mxu0 }
  0xdf   :  { %v90_v15 = vadd.f32 %v200_v10, %v89_v14  ;;  %v225_v16 = vpop.f32.mrb[3].mxu0  ;;  %v93_v17 = vmax.f32 %v87_v12, 0.0 }
  0xe1   :  { %v94_v18 = vmax.f32 %v90_v15, 0.0 }
  0xe3   :  { %v95_v19 = vpack.c.bf16 %v94_v18, %v93_v17 }
  0xe5   :  { %235 = vmatmul.mubr.msk.bf16.vlgmr.msra.gmra.mrb[0].mxu1 %vm135_vm2, %v95_v19 }
 0x1b8   :  { %v173_v21 = vpop.f32.mrb[0].mxu1 }
 0x1b9   :  { %v174_v22 = vadd.f32 %v204_v20, %v173_v21  ;;  %v236_v23 = vpop.f32.mrb[1].mxu1 }
 0x1ba   :  { %v176_v24 = vpop.f32.mrb[2].mxu1 }
 0x1bb   :  { %v180_v25 = vadd.f32 %v174_v22, %v22_v3  ;;  %v177_v26 = vadd.f32 %v204_v20, %v176_v24  ;;  %v237_v27 = vpop.f32.mrb[3].mxu1 }
 0x1bd   :  { %182 = vst.msk [vmem:[#allocation2] sm:$0xff] %vm48_vm1, %v180_v25  ;;  %v181_v28 = vadd.f32 %v177_v26, %v23_v4 }
 0x1bf   :  { %183 = vst.msk [vmem:[#allocation2 + $0x8] sm:$0xff] %vm48_vm1, %v181_v28 }
 0x1c0   :  { %260 = shalt.err (!%p257_p4)
}
 0x1c1   :  { %s261_s13 = scalar_lea.hbm %s358_s5, 256 }
 0x1c2   :  { %p262_p5 = scmp.ne.s32.totalorder %s358_s5, %s261_s13  ;;  %p265_p6 = scmp.lt.u32.totalorder %s261_s13, %s358_s5 }
 0x1c4   :  { %p267_p7 = pnand %p265_p6, %p262_p5 }
 0x1c6   :  { %270 = shalt.err (!%p267_p7)
}
 0x1c7   :  { %s276_s18 = smov 128   ;;  %s277_s19 = smov 8  }
 0x1c8   :  { %195 = dma.vmem_to_hbm [thread:$0]  %s190_s2, 256, %s358_s5, [#allocation3], %s276_s18, %s276_s18, %s277_s19  }
 0x1c9   :  { %271 = dma.done.wait [#allocation3], 256  }
 0x1ca   :  { %272 = vsyncadd [#allocation3], 4294967040 }
 0x1cb   :  { %199 = vsyncpa [#allocation3], 1 }

</bundles_post_ra>
